<compile_context>
chip_gen: v5e
topology: v5e:2x2
jax: 0.10.0
libtpu: 0.0.40
codegen_flags: <defaults>
</compile_context>

<pallas_src>
import functools

import jax
import jax.numpy as jnp
from jax.experimental import pallas as pl
from jax.experimental.pallas import tpu as pltpu


def _round_up(x, m):
    return ((x + m - 1) // m) * m


def moe_kernel(x_ref, wcat_ref, bg_ref, be_ref, o_ref, *,
               num_experts, fout, gate_off):
    # x_ref:    (TB, Fin)
    # wcat_ref: (Fin, gate_off + E_pad)  -> [expert_0 | ... | expert_{E-1} | gate (padded)]
    # bg_ref:   (1, E_pad)   gate bias, padded lanes hold -1e30
    # be_ref:   (E_pad, Fout) expert biases, padded rows hold 0
    # o_ref:    (TB, Fout)
    E = num_experts

    x = x_ref[...]

    # ---- single fused MXU push: all expert projections + gate logits ----
    y = jnp.dot(x, wcat_ref[...], preferred_element_type=jnp.float32)

    # ---- gating: softmax over the (lane-aligned, padded) expert axis ----
    gates = y[:, gate_off:] + bg_ref[...]                      # (TB, E_pad)
    m = jnp.max(gates, axis=1, keepdims=True)
    ex = jnp.exp(gates - m)                                    # padded lanes -> 0
    w = ex * pl.reciprocal(jnp.sum(ex, axis=1, keepdims=True), approx=True)

    # ---- expert biases folded into one small matmul; initializes accumulator ----
    acc = jnp.dot(w, be_ref[...], preferred_element_type=jnp.float32)  # (TB, Fout)

    # ---- weighted accumulation of expert projections (static unroll, E small) ----
    for e in range(E):
        acc = acc + w[:, e:e + 1] * y[:, e * fout:(e + 1) * fout]

    o_ref[...] = acc.astype(o_ref.dtype)


def moe_layer(x, wg, bg, we, be):
    """MoELayer forward.

    x:  (B, Fin)        activations
    wg: (Fin, E)        gate weight, pre-transposed (x @ wg == torch x @ Wg.T)
    bg: (1, E)          gate bias
    we: (E, Fin, Fout)  expert weights, pre-transposed
    be: (E, Fout)       expert biases
    """
    B, Fin = x.shape
    E, Fin2, Fout = we.shape
    assert Fin2 == Fin
    assert wg.shape == (Fin, E) and bg.shape == (1, E) and be.shape == (E, Fout)

    # Pad the gate block to a full lane group (multiple of 128 lanes).
    e_pad = _round_up(E, 128)
    gate_off = E * Fout

    # Fused weight matrix: (Fin, E*Fout + E_pad) = [expert blocks | gate block].
    w_experts = jnp.transpose(we, (1, 0, 2)).reshape(Fin, E * Fout)
    wg_p = jnp.pad(wg, ((0, 0), (0, e_pad - E)))                          # zero cols
    w_cat = jnp.concatenate([w_experts, wg_p], axis=1)
    bg_p = jnp.pad(bg, ((0, 0), (0, e_pad - E)), constant_values=-1e30)   # dead logits
    be_p = jnp.pad(be, ((0, e_pad - E), (0, 0)))                          # zero rows
    n_cat = gate_off + e_pad

    # Batch tile: as large as reasonable, multiple of 8 sublanes.
    tb = min(512, _round_up(B, 8))
    b_pad = pl.cdiv(B, tb) * tb
    x_in = x if b_pad == B else jnp.pad(x, ((0, b_pad - B), (0, 0)))

    kernel = functools.partial(moe_kernel, num_experts=E, fout=Fout,
                               gate_off=gate_off)

    out = pl.pallas_call(
        kernel,
        out_shape=jax.ShapeDtypeStruct((b_pad, Fout), jnp.float32),
        grid_spec=pltpu.PrefetchScalarGridSpec(
            num_scalar_prefetch=0,
            grid=(b_pad // tb,),
            in_specs=[
                pl.BlockSpec((tb, Fin), lambda i: (i, 0)),      # x tile (pipelined)
                pl.BlockSpec((Fin, n_cat), lambda i: (0, 0)),   # fused weights, resident
                pl.BlockSpec((1, e_pad), lambda i: (0, 0)),     # gate bias, resident
                pl.BlockSpec((e_pad, Fout), lambda i: (0, 0)),  # expert biases, resident
            ],
            out_specs=pl.BlockSpec((tb, Fout), lambda i: (i, 0)),
        ),
        compiler_params=pltpu.CompilerParams(
            dimension_semantics=("parallel",),
        ),
    )(x_in, w_cat, bg_p, be_p)

    return out[:B]


def moe_reference(x, wg, bg, we, be):
    gates = x @ wg + bg                                                  # (B, E)
    w = jax.nn.softmax(gates, axis=1)                                    # (B, E)
    expert_outputs = jnp.einsum("bf,efo->beo", x, we) + be[None, :, :]   # (B, E, Fout)
    return jnp.einsum("be,beo->bo", w, expert_outputs)


if __name__ == "__main__":
    # Shapes consistent with the module: the MoE layer inside SimpleMoENet acts
    # on hidden_features=256 with num_experts=3; small batch.
    B, Fin, Fout, E = 8, 256, 256, 3

    key = jax.random.PRNGKey(0)
    k_x, k_wg, k_bg, k_we, k_be = jax.random.split(key, 5)

    # Deterministic init, roughly matching nn.Linear's uniform(-1/sqrt(fan_in), ..).
    bound = 1.0 / jnp.sqrt(jnp.float32(Fin))
    x = jax.random.normal(k_x, (B, Fin), jnp.float32)
    wg = jax.random.uniform(k_wg, (Fin, E), jnp.float32, -bound, bound)
    bg = jax.random.uniform(k_bg, (1, E), jnp.float32, -bound, bound)
    we = jax.random.uniform(k_we, (E, Fin, Fout), jnp.float32, -bound, bound)
    be = jax.random.uniform(k_be, (E, Fout), jnp.float32, -bound, bound)

    out = moe_layer(x, wg, bg, we, be)
    out = jax.block_until_ready(out)

    ref = moe_reference(x, wg, bg, we, be)
    assert out.shape == (B, Fout)
    # Tolerance relaxed slightly for the approximate (EUP) softmax reciprocal.
    assert jnp.allclose(out, ref, atol=2e-3, rtol=2e-3), "mismatch vs reference"

    print("KERNEL_OK")
</pallas_src>

<mosaic_0001>
module attributes {stable_mosaic.version = 11 : i64} {
  func.func @moe_kernel(%arg0: i32, %arg1: memref<8x256xf32, #tpu.memory_space<vmem>>, %arg2: memref<256x896xf32, #tpu.memory_space<vmem>>, %arg3: memref<1x128xf32, #tpu.memory_space<vmem>>, %arg4: memref<128x256xf32, #tpu.memory_space<vmem>>, %arg5: memref<8x256xf32, #tpu.memory_space<vmem>>) attributes {dimension_semantics = [#tpu.dimension_semantics<parallel>], iteration_bounds = array<i64: 1>, scalar_prefetch = 0 : i64, scratch_operands = 0 : i64, tpu.core_type = #tpu.core_type<tc>, window_params = [{transform_indices = @transform_0, window_bounds = array<i64: 8, 256>}, {pipeline_mode = #tpu.pipeline_mode<synchronous>, transform_indices = @transform_1, window_bounds = array<i64: 256, 896>}, {pipeline_mode = #tpu.pipeline_mode<synchronous>, transform_indices = @transform_2, window_bounds = array<i64: 1, 128>}, {pipeline_mode = #tpu.pipeline_mode<synchronous>, transform_indices = @transform_3, window_bounds = array<i64: 128, 256>}, {transform_indices = @transform_4, window_bounds = array<i64: 8, 256>}]} {
    %c0 = arith.constant 0 : index
    %c0_0 = arith.constant 0 : index
    %0 = vector.load %arg1[%c0, %c0_0] : memref<8x256xf32, #tpu.memory_space<vmem>>, vector<8x256xf32>
    %c0_1 = arith.constant 0 : index
    %c0_2 = arith.constant 0 : index
    %1 = vector.load %arg2[%c0_1, %c0_2] : memref<256x896xf32, #tpu.memory_space<vmem>>, vector<256x896xf32>
    %cst = arith.constant dense<0.000000e+00> : vector<8x896xf32>
    %2 = tpu.matmul %0, %1, %cst {dimension_numbers = #tpu.dot_dimension_numbers<[1], [0], [0], [1], [0, 0, 1, 1], [], []>} : vector<8x256xf32>, vector<256x896xf32>, vector<8x896xf32> -> vector<8x896xf32>
    %3 = vector.extract_strided_slice %2 {offsets = [0, 768], sizes = [8, 128], strides = [1, 1]} : vector<8x896xf32> to vector<8x128xf32>
    %c0_3 = arith.constant 0 : index
    %c0_4 = arith.constant 0 : index
    %4 = vector.load %arg3[%c0_3, %c0_4] : memref<1x128xf32, #tpu.memory_space<vmem>>, vector<1x128xf32>
    %5 = vector.broadcast %4 : vector<1x128xf32> to vector<8x128xf32>
    %6 = arith.addf %3, %5 : vector<8x128xf32>
    %cst_5 = arith.constant dense<0xFF800000> : vector<8xf32>
    %7 = vector.multi_reduction <maximumf>, %6, %cst_5 [1] : vector<8x128xf32> to vector<8xf32>
    %8 = vector.shape_cast %7 : vector<8xf32> to vector<8x1xf32>
    %9 = vector.broadcast %8 : vector<8x1xf32> to vector<8x128xf32>
    %10 = arith.subf %6, %9 : vector<8x128xf32>
    %11 = math.exp %10 : vector<8x128xf32>
    %cst_6 = arith.constant dense<0.000000e+00> : vector<8xf32>
    %12 = vector.multi_reduction <add>, %11, %cst_6 [1] : vector<8x128xf32> to vector<8xf32>
    %13 = vector.shape_cast %12 : vector<8xf32> to vector<8x1xf32>
    %14 = tpu.reciprocal %13 {approx = true} : vector<8x1xf32> -> vector<8x1xf32>
    %15 = vector.broadcast %14 : vector<8x1xf32> to vector<8x128xf32>
    %16 = arith.mulf %11, %15 : vector<8x128xf32>
    %c0_7 = arith.constant 0 : index
    %c0_8 = arith.constant 0 : index
    %17 = vector.load %arg4[%c0_7, %c0_8] : memref<128x256xf32, #tpu.memory_space<vmem>>, vector<128x256xf32>
    %cst_9 = arith.constant dense<0.000000e+00> : vector<8x256xf32>
    %18 = tpu.matmul %16, %17, %cst_9 {dimension_numbers = #tpu.dot_dimension_numbers<[1], [0], [0], [1], [0, 0, 1, 1], [], []>} : vector<8x128xf32>, vector<128x256xf32>, vector<8x256xf32> -> vector<8x256xf32>
    %19 = vector.extract_strided_slice %16 {offsets = [0, 0], sizes = [8, 1], strides = [1, 1]} : vector<8x128xf32> to vector<8x1xf32>
    %20 = vector.extract_strided_slice %2 {offsets = [0, 0], sizes = [8, 256], strides = [1, 1]} : vector<8x896xf32> to vector<8x256xf32>
    %21 = vector.broadcast %19 : vector<8x1xf32> to vector<8x256xf32>
    %22 = arith.mulf %21, %20 : vector<8x256xf32>
    %23 = arith.addf %18, %22 : vector<8x256xf32>
    %24 = vector.extract_strided_slice %16 {offsets = [0, 1], sizes = [8, 1], strides = [1, 1]} : vector<8x128xf32> to vector<8x1xf32>
    %25 = vector.extract_strided_slice %2 {offsets = [0, 256], sizes = [8, 256], strides = [1, 1]} : vector<8x896xf32> to vector<8x256xf32>
    %26 = vector.broadcast %24 : vector<8x1xf32> to vector<8x256xf32>
    %27 = arith.mulf %26, %25 : vector<8x256xf32>
    %28 = arith.addf %23, %27 : vector<8x256xf32>
    %29 = vector.extract_strided_slice %16 {offsets = [0, 2], sizes = [8, 1], strides = [1, 1]} : vector<8x128xf32> to vector<8x1xf32>
    %30 = vector.extract_strided_slice %2 {offsets = [0, 512], sizes = [8, 256], strides = [1, 1]} : vector<8x896xf32> to vector<8x256xf32>
    %31 = vector.broadcast %29 : vector<8x1xf32> to vector<8x256xf32>
    %32 = arith.mulf %31, %30 : vector<8x256xf32>
    %33 = arith.addf %28, %32 : vector<8x256xf32>
    %c0_10 = arith.constant 0 : index
    %c0_11 = arith.constant 0 : index
    %34 = vector.load %arg5[%c0_10, %c0_11] : memref<8x256xf32, #tpu.memory_space<vmem>>, vector<8x256xf32>
    tpu.vector_store %arg5[%c0_10, %c0_11], %33 {strides = array<i32>} : memref<8x256xf32, #tpu.memory_space<vmem>>, vector<8x256xf32>,
    return
  }
  func.func @transform_0(%arg0: i32) -> (i32, i32) {
    %c0_i32 = arith.constant 0 : i32
    %c0_i32_0 = arith.constant 0 : i32
    return %arg0, %c0_i32 : i32, i32
  }
  func.func @transform_1(%arg0: i32) -> (i32, i32) {
    %c0_i32 = arith.constant 0 : i32
    %c0_i32_0 = arith.constant 0 : i32
    %c0_i32_1 = arith.constant 0 : i32
    return %c0_i32, %c0_i32_0 : i32, i32
  }
  func.func @transform_2(%arg0: i32) -> (i32, i32) {
    %c0_i32 = arith.constant 0 : i32
    %c0_i32_0 = arith.constant 0 : i32
    %c0_i32_1 = arith.constant 0 : i32
    return %c0_i32, %c0_i32_0 : i32, i32
  }
  func.func @transform_3(%arg0: i32) -> (i32, i32) {
    %c0_i32 = arith.constant 0 : i32
    %c0_i32_0 = arith.constant 0 : i32
    %c0_i32_1 = arith.constant 0 : i32
    return %c0_i32, %c0_i32_0 : i32, i32
  }
  func.func @transform_4(%arg0: i32) -> (i32, i32) {
    %c0_i32 = arith.constant 0 : i32
    %c0_i32_0 = arith.constant 0 : i32
    return %arg0, %c0_i32 : i32, i32
  }
}

</mosaic_0001>

<bundles_post_ra>
// kernel: tpu_custom_call.1
= control target key start
LH: loop header
LB: loop body
LE: loop exit
PB: predicated region body
PF: predicated region fallthrough
CT: control target
= control target key end

     0   :  { %9 = vsyncpa [#allocation3], 0  ;;  %s906_s0 = inlined_call_operand.hbm [shape: f32[8,256], index: 0, kind: input, shape index: {}]   ;;  %s907_s1 = inlined_call_operand.hbm [shape: f32[256,896], index: 1, kind: input, shape index: {}]   ;;  %s908_s2 = inlined_call_operand.vmem [shape: f32[1,128], index: 2, kind: input, shape index: {}]   ;;  %s909_s3 = inlined_call_operand.hbm [shape: f32[128,256], index: 3, kind: input, shape index: {}]   ;;  %s910_s4 = inlined_call_operand.hbm [shape: f32[8,256], index: 4, kind: output, shape index: {}]  }
   0x1   :  { %10 = vsyncpa [#allocation6], 0  ;;  %s27_s17 = sshll.u32 %s907_s1, 4  ;;  %s28_s17 = int_to_ptr.hbm [resolvable:$true] %s27_s17 }
   0x2   :  { %11 = vsyncpa [#allocation4], 0  ;;  %s820_s18 = smov [#allocation5]   ;;  %s17_s22 = sshll.u32 %s906_s0, 4  ;;  %s18_s22 = int_to_ptr.hbm [resolvable:$true] %s17_s22 }
   0x3   :  { %s29_s19 = sshll.u32 %s820_s18, 4  ;;  %s821_s23 = smov 896   ;;  %s30_s19 = int_to_ptr.vmem [resolvable:$true] %s29_s19 }
   0x4   :  { %s822_s24 = smov 56   ;;  %s823_s25 = smov [#allocation2]  }
   0x5   :  { %35 = dma.hbm_to_vmem [thread:$0]  %s28_s17, 28672, %s30_s19, [#allocation6], %s821_s23, %s821_s23, %s822_s24  }
   0x6   :  { %s19_s26 = sshll.u32 %s823_s25, 4  ;;  %s42_s29 = sshll.u32 %s909_s3, 4  ;;  %s20_s26 = int_to_ptr.vmem [resolvable:$true] %s19_s26  ;;  %s43_s29 = int_to_ptr.hbm [resolvable:$true] %s42_s29 }
   0x7   :  { %22 = dma.hbm_to_vmem [thread:$0]  %s18_s22, 256, %s20_s26, [#allocation3]  }
   0x8   :  { %s824_s1 = smov [#allocation7]   ;;  %s825_s5 = smov 256  }
   0x9   :  { %s44_s30 = sshll.u32 %s824_s1, 4  ;;  %s826_s6 = smov 16   ;;  %s45_s30 = int_to_ptr.vmem [resolvable:$true] %s44_s30 }
   0xa   :  { %50 = dma.hbm_to_vmem [thread:$0]  %s43_s29, 4096, %s45_s30, [#allocation6], %s825_s5, %s825_s5, %s826_s6  }
   0xb   :  { %814 = dma.done.wait [#allocation3], 256  }
   0xc   :  { %815 = vsyncadd [#allocation3], 4294967040 }
   0xd   :  { %816 = dma.done.wait [#allocation6], 32768  }
   0xe   :  { %817 = vsyncadd [#allocation6], 4294934528  ;;  %v170_v0 = vld [vmem:[#allocation5 + $0x348] sm:$0xff]  ;;  %v163_v2 = vld [vmem:[#allocation5 + $0x310] sm:$0xff]  ;;  %s687_s10 = sshll.u32 %s910_s4, 4  ;;  %s688_s10 = int_to_ptr.hbm [resolvable:$true] %s687_s10 }
   0xf   :  { %v282_v1 = vld [vmem:[#allocation5 + $0x6c8] sm:$0xff]  ;;  %289 = vmatpush.msra.mxu0 %v170_v0  ;;  %v275_v3 = vld [vmem:[#allocation5 + $0x690] sm:$0xff]  ;;  %v156_v4 = vld [vmem:[#allocation5 + $0x2d8] sm:$0xff] }
  0x10   :  { %309 = vmatpush.msra.mxu1 %v282_v1  ;;  %v268_v5 = vld [vmem:[#allocation5 + $0x658] sm:$0xff]  ;;  %v149_v6 = vld [vmem:[#allocation5 + $0x2a0] sm:$0xff]  ;;  %v142_v8 = vld [vmem:[#allocation5 + $0x268] sm:$0xff] }
  0x11   :  { %290 = vmatpush.msra.mxu0 %v163_v2  ;;  %v261_v7 = vld [vmem:[#allocation5 + $0x620] sm:$0xff]  ;;  %v254_v9 = vld [vmem:[#allocation5 + $0x5e8] sm:$0xff]  ;;  %v135_v10 = vld [vmem:[#allocation5 + $0x230] sm:$0xff] }
  0x12   :  { %310 = vmatpush.msra.mxu1 %v275_v3  ;;  %v247_v11 = vld [vmem:[#allocation5 + $0x5b0] sm:$0xff]  ;;  %v128_v12 = vld [vmem:[#allocation5 + $0x1f8] sm:$0xff]  ;;  %v121_v14 = vld [vmem:[#allocation5 + $0x1c0] sm:$0xff] }
  0x13   :  { %291 = vmatpush.msra.mxu0 %v156_v4  ;;  %v240_v13 = vld [vmem:[#allocation5 + $0x578] sm:$0xff]  ;;  %v233_v15 = vld [vmem:[#allocation5 + $0x540] sm:$0xff]  ;;  %v114_v16 = vld [vmem:[#allocation5 + $0x188] sm:$0xff] }
  0x14   :  { %311 = vmatpush.msra.mxu1 %v268_v5  ;;  %v226_v17 = vld [vmem:[#allocation5 + $0x508] sm:$0xff]  ;;  %v107_v18 = vld [vmem:[#allocation5 + $0x150] sm:$0xff]  ;;  %v100_v20 = vld [vmem:[#allocation5 + $0x118] sm:$0xff] }
  0x15   :  { %292 = vmatpush.msra.mxu0 %v149_v6  ;;  %v219_v19 = vld [vmem:[#allocation5 + $0x4d0] sm:$0xff]  ;;  %v212_v21 = vld [vmem:[#allocation5 + $0x498] sm:$0xff]  ;;  %v93_v22 = vld [vmem:[#allocation5 + $0xe0] sm:$0xff] }
  0x16   :  { %312 = vmatpush.msra.mxu1 %v261_v7  ;;  %v205_v23 = vld [vmem:[#allocation5 + $0x460] sm:$0xff]  ;;  %v86_v24 = vld [vmem:[#allocation5 + $0xa8] sm:$0xff]  ;;  %v79_v26 = vld [vmem:[#allocation5 + $0x70] sm:$0xff] }
  0x17   :  { %293 = vmatpush.msra.mxu0 %v142_v8  ;;  %v198_v25 = vld [vmem:[#allocation5 + $0x428] sm:$0xff]  ;;  %v191_v27 = vld [vmem:[#allocation5 + $0x3f0] sm:$0xff]  ;;  %v72_v28 = vld [vmem:[#allocation5 + $0x38] sm:$0xff] }
  0x18   :  { %313 = vmatpush.msra.mxu1 %v254_v9  ;;  %v184_v29 = vld [vmem:[#allocation5 + $0x3b8] sm:$0xff]  ;;  %v65_v30 = vld [vmem:[#allocation5] sm:$0xff]  ;;  %v865_v34 = vld [vmem:[#allocation2] sm:$0xff] }
  0x19   :  { %294 = vmatpush.msra.mxu0 %v135_v10  ;;  %v177_v31 = vld [vmem:[#allocation5 + $0x380] sm:$0xff]  ;;  %v172_v32 = vld [vmem:[#allocation5 + $0x358] sm:$0xff]  ;;  %v158_v38 = vld [vmem:[#allocation5 + $0x2e8] sm:$0xff] }
  0x1a   :  { %314 = vmatpush.msra.mxu1 %v247_v11  ;;  %v284_v33 = vld [vmem:[#allocation5 + $0x6d8] sm:$0xff]  ;;  %v165_v36 = vld [vmem:[#allocation5 + $0x320] sm:$0xff]  ;;  %v270_v39 = vld [vmem:[#allocation5 + $0x668] sm:$0xff] }
  0x1b   :  { %295 = vmatpush.msra.mxu0 %v128_v12  ;;  %v867_v35 = vld [vmem:[#allocation2 + $0x8] sm:$0xff]  ;;  %v277_v37 = vld [vmem:[#allocation5 + $0x6a0] sm:$0xff]  ;;  %v151_v40 = vld [vmem:[#allocation5 + $0x2b0] sm:$0xff] }
  0x1c   :  { %315 = vmatpush.msra.mxu1 %v240_v13  ;;  %v263_v41 = vld [vmem:[#allocation5 + $0x630] sm:$0xff]  ;;  %v144_v42 = vld [vmem:[#allocation5 + $0x278] sm:$0xff]  ;;  %v137_v44 = vld [vmem:[#allocation5 + $0x240] sm:$0xff] }
  0x1d   :  { %296 = vmatpush.msra.mxu0 %v121_v14  ;;  %v256_v43 = vld [vmem:[#allocation5 + $0x5f8] sm:$0xff]  ;;  %v249_v45 = vld [vmem:[#allocation5 + $0x5c0] sm:$0xff]  ;;  %v130_v46 = vld [vmem:[#allocation5 + $0x208] sm:$0xff] }
  0x1e   :  { %316 = vmatpush.msra.mxu1 %v233_v15  ;;  %v242_v47 = vld [vmem:[#allocation5 + $0x588] sm:$0xff]  ;;  %v123_v48 = vld [vmem:[#allocation5 + $0x1d0] sm:$0xff]  ;;  %v116_v50 = vld [vmem:[#allocation5 + $0x198] sm:$0xff] }
  0x1f   :  { %297 = vmatpush.msra.mxu0 %v114_v16  ;;  %v235_v49 = vld [vmem:[#allocation5 + $0x550] sm:$0xff]  ;;  %v228_v51 = vld [vmem:[#allocation5 + $0x518] sm:$0xff]  ;;  %v109_v52 = vld [vmem:[#allocation5 + $0x160] sm:$0xff] }
  0x20   :  { %317 = vmatpush.msra.mxu1 %v226_v17  ;;  %v221_v53 = vld [vmem:[#allocation5 + $0x4e0] sm:$0xff]  ;;  %v102_v54 = vld [vmem:[#allocation5 + $0x128] sm:$0xff]  ;;  %v95_v56 = vld [vmem:[#allocation5 + $0xf0] sm:$0xff] }
  0x21   :  { %298 = vmatpush.msra.mxu0 %v107_v18  ;;  %v214_v55 = vld [vmem:[#allocation5 + $0x4a8] sm:$0xff]  ;;  %v207_v57 = vld [vmem:[#allocation5 + $0x470] sm:$0xff]  ;;  %v88_v58 = vld [vmem:[#allocation5 + $0xb8] sm:$0xff] }
  0x22   :  { %318 = vmatpush.msra.mxu1 %v219_v19  ;;  %v200_v59 = vld [vmem:[#allocation5 + $0x438] sm:$0xff]  ;;  %v81_v60 = vld [vmem:[#allocation5 + $0x80] sm:$0xff]  ;;  %v74_v62 = vld [vmem:[#allocation5 + $0x48] sm:$0xff] }
  0x23   :  { %299 = vmatpush.msra.mxu0 %v100_v20  ;;  %v193_v61 = vld [vmem:[#allocation5 + $0x400] sm:$0xff]  ;;  %v186_v63 = vld [vmem:[#allocation5 + $0x3c8] sm:$0xff]  ;;  %v67_v0 = vld [vmem:[#allocation5 + $0x10] sm:$0xff] }
  0x24   :  { %319 = vmatpush.msra.mxu1 %v212_v21  ;;  %v179_v1 = vld [vmem:[#allocation5 + $0x390] sm:$0xff]  ;;  %v174_v2 = vld [vmem:[#allocation5 + $0x368] sm:$0xff]  ;;  %v160_v6 = vld [vmem:[#allocation5 + $0x2f8] sm:$0xff] }
  0x25   :  { %300 = vmatpush.msra.mxu0 %v93_v22  ;;  %v286_v3 = vld [vmem:[#allocation5 + $0x6e8] sm:$0xff]  ;;  %v167_v4 = vld [vmem:[#allocation5 + $0x330] sm:$0xff]  ;;  %v272_v7 = vld [vmem:[#allocation5 + $0x678] sm:$0xff] }
  0x26   :  { %320 = vmatpush.msra.mxu1 %v205_v23  ;;  %v279_v5 = vld [vmem:[#allocation5 + $0x6b0] sm:$0xff]  ;;  %v153_v8 = vld [vmem:[#allocation5 + $0x2c0] sm:$0xff]  ;;  %v146_v10 = vld [vmem:[#allocation5 + $0x288] sm:$0xff] }
  0x27   :  { %301 = vmatpush.msra.mxu0 %v86_v24  ;;  %v265_v9 = vld [vmem:[#allocation5 + $0x640] sm:$0xff]  ;;  %v258_v11 = vld [vmem:[#allocation5 + $0x608] sm:$0xff]  ;;  %v139_v12 = vld [vmem:[#allocation5 + $0x250] sm:$0xff] }
  0x28   :  { %321 = vmatpush.msra.mxu1 %v198_v25  ;;  %v251_v13 = vld [vmem:[#allocation5 + $0x5d0] sm:$0xff]  ;;  %v132_v14 = vld [vmem:[#allocation5 + $0x218] sm:$0xff]  ;;  %v125_v16 = vld [vmem:[#allocation5 + $0x1e0] sm:$0xff] }
  0x29   :  { %302 = vmatpush.msra.mxu0 %v79_v26  ;;  %v244_v15 = vld [vmem:[#allocation5 + $0x598] sm:$0xff]  ;;  %v237_v17 = vld [vmem:[#allocation5 + $0x560] sm:$0xff]  ;;  %v118_v18 = vld [vmem:[#allocation5 + $0x1a8] sm:$0xff] }
  0x2a   :  { %322 = vmatpush.msra.mxu1 %v191_v27  ;;  %v230_v19 = vld [vmem:[#allocation5 + $0x528] sm:$0xff]  ;;  %v111_v20 = vld [vmem:[#allocation5 + $0x170] sm:$0xff]  ;;  %v104_v22 = vld [vmem:[#allocation5 + $0x138] sm:$0xff] }
  0x2b   :  { %303 = vmatpush.msra.mxu0 %v72_v28  ;;  %v223_v21 = vld [vmem:[#allocation5 + $0x4f0] sm:$0xff]  ;;  %v216_v23 = vld [vmem:[#allocation5 + $0x4b8] sm:$0xff]  ;;  %v97_v24 = vld [vmem:[#allocation5 + $0x100] sm:$0xff] }
  0x2c   :  { %323 = vmatpush.msra.mxu1 %v184_v29  ;;  %v209_v25 = vld [vmem:[#allocation5 + $0x480] sm:$0xff]  ;;  %v90_v26 = vld [vmem:[#allocation5 + $0xc8] sm:$0xff]  ;;  %v83_v28 = vld [vmem:[#allocation5 + $0x90] sm:$0xff] }
  0x2d   :  { %304 = vmatpush.msra.mxu0 %v65_v30  ;;  %v202_v27 = vld [vmem:[#allocation5 + $0x448] sm:$0xff]  ;;  %v195_v29 = vld [vmem:[#allocation5 + $0x410] sm:$0xff]  ;;  %v76_v30 = vld [vmem:[#allocation5 + $0x58] sm:$0xff] }
  0x2e   :  { %324 = vmatpush.msra.mxu1 %v177_v31  ;;  %305 = vmatmul.f32.vlgmr.msra.gmra.mxu0 %v865_v34  ;;  %v188_v31 = vld [vmem:[#allocation5 + $0x3d8] sm:$0xff] }
  0x2f   :  { %369 = vmatpush.msrb.mxu0 %v172_v32  ;;  %325 = vmatmul.f32.vlgmr.msra.gmra.mxu1 %v867_v35  ;;  %v69_v32 = vld [vmem:[#allocation5 + $0x20] sm:$0xff] }
  0x30   :  { %389 = vmatpush.msrb.mxu1 %v284_v33  ;;  %v181_v33 = vld [vmem:[#allocation5 + $0x3a0] sm:$0xff] }
  0x31   :  { %370 = vmatpush.msrb.mxu0 %v165_v36  ;;  %v176_v36 = vld [vmem:[#allocation5 + $0x378] sm:$0xff] }
  0x32   :  { %390 = vmatpush.msrb.mxu1 %v277_v37  ;;  %v288_v37 = vld [vmem:[#allocation5 + $0x6f8] sm:$0xff] }
  0x33   :  { %371 = vmatpush.msrb.mxu0 %v158_v38  ;;  %v169_v38 = vld [vmem:[#allocation5 + $0x340] sm:$0xff] }
  0x34   :  { %391 = vmatpush.msrb.mxu1 %v270_v39  ;;  %v281_v39 = vld [vmem:[#allocation5 + $0x6c0] sm:$0xff] }
  0x35   :  { %372 = vmatpush.msrb.mxu0 %v151_v40  ;;  %v162_v40 = vld [vmem:[#allocation5 + $0x308] sm:$0xff] }
  0x36   :  { %392 = vmatpush.msrb.mxu1 %v263_v41  ;;  %v274_v41 = vld [vmem:[#allocation5 + $0x688] sm:$0xff] }
  0x37   :  { %373 = vmatpush.msrb.mxu0 %v144_v42  ;;  %v155_v42 = vld [vmem:[#allocation5 + $0x2d0] sm:$0xff] }
  0x38   :  { %393 = vmatpush.msrb.mxu1 %v256_v43  ;;  %v267_v43 = vld [vmem:[#allocation5 + $0x650] sm:$0xff] }
  0x39   :  { %374 = vmatpush.msrb.mxu0 %v137_v44  ;;  %v148_v44 = vld [vmem:[#allocation5 + $0x298] sm:$0xff] }
  0x3a   :  { %394 = vmatpush.msrb.mxu1 %v249_v45  ;;  %v260_v45 = vld [vmem:[#allocation5 + $0x618] sm:$0xff] }
  0x3b   :  { %375 = vmatpush.msrb.mxu0 %v130_v46  ;;  %v141_v46 = vld [vmem:[#allocation5 + $0x260] sm:$0xff] }
  0x3c   :  { %395 = vmatpush.msrb.mxu1 %v242_v47  ;;  %v253_v47 = vld [vmem:[#allocation5 + $0x5e0] sm:$0xff] }
  0x3d   :  { %376 = vmatpush.msrb.mxu0 %v123_v48  ;;  %v134_v48 = vld [vmem:[#allocation5 + $0x228] sm:$0xff] }
  0x3e   :  { %396 = vmatpush.msrb.mxu1 %v235_v49  ;;  %v246_v49 = vld [vmem:[#allocation5 + $0x5a8] sm:$0xff] }
  0x3f   :  { %377 = vmatpush.msrb.mxu0 %v116_v50  ;;  %v127_v50 = vld [vmem:[#allocation5 + $0x1f0] sm:$0xff] }
  0x40   :  { %397 = vmatpush.msrb.mxu1 %v228_v51  ;;  %v239_v51 = vld [vmem:[#allocation5 + $0x570] sm:$0xff] }
  0x41   :  { %378 = vmatpush.msrb.mxu0 %v109_v52  ;;  %v120_v52 = vld [vmem:[#allocation5 + $0x1b8] sm:$0xff] }
  0x42   :  { %398 = vmatpush.msrb.mxu1 %v221_v53  ;;  %v232_v53 = vld [vmem:[#allocation5 + $0x538] sm:$0xff] }
  0x43   :  { %379 = vmatpush.msrb.mxu0 %v102_v54  ;;  %v113_v54 = vld [vmem:[#allocation5 + $0x180] sm:$0xff] }
  0x44   :  { %399 = vmatpush.msrb.mxu1 %v214_v55  ;;  %v225_v55 = vld [vmem:[#allocation5 + $0x500] sm:$0xff] }
  0x45   :  { %380 = vmatpush.msrb.mxu0 %v95_v56  ;;  %v106_v56 = vld [vmem:[#allocation5 + $0x148] sm:$0xff] }
  0x46   :  { %400 = vmatpush.msrb.mxu1 %v207_v57  ;;  %v218_v57 = vld [vmem:[#allocation5 + $0x4c8] sm:$0xff] }
  0x47   :  { %381 = vmatpush.msrb.mxu0 %v88_v58  ;;  %v99_v58 = vld [vmem:[#allocation5 + $0x110] sm:$0xff] }
  0x48   :  { %401 = vmatpush.msrb.mxu1 %v200_v59  ;;  %v211_v59 = vld [vmem:[#allocation5 + $0x490] sm:$0xff] }
  0x49   :  { %382 = vmatpush.msrb.mxu0 %v81_v60  ;;  %v92_v60 = vld [vmem:[#allocation5 + $0xd8] sm:$0xff] }
  0x4a   :  { %402 = vmatpush.msrb.mxu1 %v193_v61  ;;  %v204_v61 = vld [vmem:[#allocation5 + $0x458] sm:$0xff] }
  0x4b   :  { %383 = vmatpush.msrb.mxu0 %v74_v62  ;;  %v85_v62 = vld [vmem:[#allocation5 + $0xa0] sm:$0xff] }
  0x4c   :  { %403 = vmatpush.msrb.mxu1 %v186_v63  ;;  %v197_v63 = vld [vmem:[#allocation5 + $0x420] sm:$0xff] }
  0x4d   :  { %384 = vmatpush.msrb.mxu0 %v67_v0  ;;  %v78_v0 = vld [vmem:[#allocation5 + $0x68] sm:$0xff] }
  0x4e   :  { %404 = vmatpush.msrb.mxu1 %v179_v1  ;;  %385 = vmatmul.f32.vlgmr.msrb.gmra.mxu0 %v865_v34  ;;  %v190_v1 = vld [vmem:[#allocation5 + $0x3e8] sm:$0xff] }
  0x4f   :  { %449 = vmatpush.msra.mxu0 %v174_v2  ;;  %405 = vmatmul.f32.vlgmr.msrb.gmra.mxu1 %v867_v35  ;;  %v71_v2 = vld [vmem:[#allocation5 + $0x30] sm:$0xff] }
  0x50   :  { %469 = vmatpush.msra.mxu1 %v286_v3  ;;  %v183_v3 = vld [vmem:[#allocation5 + $0x3b0] sm:$0xff] }
  0x51   :  { %450 = vmatpush.msra.mxu0 %v167_v4 }
  0x52   :  { %470 = vmatpush.msra.mxu1 %v279_v5 }
  0x53   :  { %451 = vmatpush.msra.mxu0 %v160_v6 }
  0x54   :  { %471 = vmatpush.msra.mxu1 %v272_v7 }
  0x55   :  { %452 = vmatpush.msra.mxu0 %v153_v8 }
  0x56   :  { %472 = vmatpush.msra.mxu1 %v265_v9 }
  0x57   :  { %453 = vmatpush.msra.mxu0 %v146_v10 }
  0x58   :  { %473 = vmatpush.msra.mxu1 %v258_v11 }
  0x59   :  { %454 = vmatpush.msra.mxu0 %v139_v12 }
  0x5a   :  { %474 = vmatpush.msra.mxu1 %v251_v13  ;;  %v713_v13 = vld [vmem:[%s908_s2] ss:$0 sm:$0xff]  ;;  %s830_s2 = smov [#allocation8]  }
  0x5b   :  { %455 = vmatpush.msra.mxu0 %v132_v14  ;;  %s685_s7 = sshll.u32 %s830_s2, 4  ;;  %s686_s7 = int_to_ptr.vmem [resolvable:$true] %s685_s7 }
  0x5c   :  { %475 = vmatpush.msra.mxu1 %v244_v15 }
  0x5d   :  { %456 = vmatpush.msra.mxu0 %v125_v16 }
  0x5e   :  { %476 = vmatpush.msra.mxu1 %v237_v17 }
  0x5f   :  { %457 = vmatpush.msra.mxu0 %v118_v18  ;;  %v171_v18 = vld [vmem:[#allocation5 + $0x350] sm:$0xff] }
  0x60   :  { %477 = vmatpush.msra.mxu1 %v230_v19  ;;  %v283_v19 = vld [vmem:[#allocation5 + $0x6d0] sm:$0xff]  ;;  %329 = vmatpush.msra.mxu2 %v171_v18  ;;  %v208_v18 = vld [vmem:[#allocation5 + $0x478] sm:$0xff] }
  0x61   :  { %458 = vmatpush.msra.mxu0 %v111_v20  ;;  %349 = vmatpush.msra.mxu3 %v283_v19  ;;  %v164_v20 = vld [vmem:[#allocation5 + $0x318] sm:$0xff]  ;;  %v89_v19 = vld [vmem:[#allocation5 + $0xc0] sm:$0xff] }
  0x62   :  { %478 = vmatpush.msra.mxu1 %v223_v21  ;;  %v276_v21 = vld [vmem:[#allocation5 + $0x698] sm:$0xff]  ;;  %330 = vmatpush.msra.mxu2 %v164_v20  ;;  %v201_v20 = vld [vmem:[#allocation5 + $0x440] sm:$0xff] }
  0x63   :  { %459 = vmatpush.msra.mxu0 %v104_v22  ;;  %350 = vmatpush.msra.mxu3 %v276_v21  ;;  %v157_v22 = vld [vmem:[#allocation5 + $0x2e0] sm:$0xff]  ;;  %v82_v21 = vld [vmem:[#allocation5 + $0x88] sm:$0xff] }
  0x64   :  { %479 = vmatpush.msra.mxu1 %v216_v23  ;;  %v269_v23 = vld [vmem:[#allocation5 + $0x660] sm:$0xff]  ;;  %331 = vmatpush.msra.mxu2 %v157_v22  ;;  %v194_v22 = vld [vmem:[#allocation5 + $0x408] sm:$0xff] }
  0x65   :  { %460 = vmatpush.msra.mxu0 %v97_v24  ;;  %351 = vmatpush.msra.mxu3 %v269_v23  ;;  %v150_v24 = vld [vmem:[#allocation5 + $0x2a8] sm:$0xff]  ;;  %v75_v23 = vld [vmem:[#allocation5 + $0x50] sm:$0xff] }
  0x66   :  { %480 = vmatpush.msra.mxu1 %v209_v25  ;;  %v262_v25 = vld [vmem:[#allocation5 + $0x628] sm:$0xff]  ;;  %332 = vmatpush.msra.mxu2 %v150_v24  ;;  %v187_v24 = vld [vmem:[#allocation5 + $0x3d0] sm:$0xff] }
  0x67   :  { %461 = vmatpush.msra.mxu0 %v90_v26  ;;  %v143_v26 = vld [vmem:[#allocation5 + $0x270] sm:$0xff]  ;;  %352 = vmatpush.msra.mxu3 %v262_v25  ;;  %v68_v25 = vld [vmem:[#allocation5 + $0x18] sm:$0xff] }
  0x68   :  { %481 = vmatpush.msra.mxu1 %v202_v27  ;;  %v255_v27 = vld [vmem:[#allocation5 + $0x5f0] sm:$0xff]  ;;  %333 = vmatpush.msra.mxu2 %v143_v26  ;;  %v180_v26 = vld [vmem:[#allocation5 + $0x398] sm:$0xff] }
  0x69   :  { %462 = vmatpush.msra.mxu0 %v83_v28  ;;  %v136_v28 = vld [vmem:[#allocation5 + $0x238] sm:$0xff]  ;;  %353 = vmatpush.msra.mxu3 %v255_v27  ;;  %v175_v27 = vld [vmem:[#allocation5 + $0x370] sm:$0xff] }
  0x6a   :  { %482 = vmatpush.msra.mxu1 %v195_v29  ;;  %v248_v29 = vld [vmem:[#allocation5 + $0x5b8] sm:$0xff]  ;;  %334 = vmatpush.msra.mxu2 %v136_v28  ;;  %v287_v28 = vld [vmem:[#allocation5 + $0x6f0] sm:$0xff] }
  0x6b   :  { %463 = vmatpush.msra.mxu0 %v76_v30  ;;  %354 = vmatpush.msra.mxu3 %v248_v29  ;;  %v129_v30 = vld [vmem:[#allocation5 + $0x200] sm:$0xff]  ;;  %v168_v29 = vld [vmem:[#allocation5 + $0x338] sm:$0xff] }
  0x6c   :  { %483 = vmatpush.msra.mxu1 %v188_v31  ;;  %v241_v31 = vld [vmem:[#allocation5 + $0x580] sm:$0xff]  ;;  %335 = vmatpush.msra.mxu2 %v129_v30  ;;  %v280_v30 = vld [vmem:[#allocation5 + $0x6b8] sm:$0xff] }
  0x6d   :  { %464 = vmatpush.msra.mxu0 %v69_v32  ;;  %v122_v32 = vld [vmem:[#allocation5 + $0x1c8] sm:$0xff]  ;;  %355 = vmatpush.msra.mxu3 %v241_v31  ;;  %v161_v31 = vld [vmem:[#allocation5 + $0x300] sm:$0xff] }
  0x6e   :  { %484 = vmatpush.msra.mxu1 %v181_v33  ;;  %465 = vmatmul.f32.vlgmr.msra.gmra.mxu0 %v865_v34  ;;  %v234_v33 = vld [vmem:[#allocation5 + $0x548] sm:$0xff] }
  0x6f   :  { %529 = vmatpush.msrb.mxu0 %v176_v36  ;;  %485 = vmatmul.f32.vlgmr.msra.gmra.mxu1 %v867_v35  ;;  %v115_v36 = vld [vmem:[#allocation5 + $0x190] sm:$0xff] }
  0x70   :  { %549 = vmatpush.msrb.mxu1 %v288_v37  ;;  %v227_v37 = vld [vmem:[#allocation5 + $0x510] sm:$0xff]  ;;  %336 = vmatpush.msra.mxu2 %v122_v32  ;;  %v273_v32 = vld [vmem:[#allocation5 + $0x680] sm:$0xff] }
  0x71   :  { %530 = vmatpush.msrb.mxu0 %v169_v38  ;;  %356 = vmatpush.msra.mxu3 %v234_v33  ;;  %v108_v38 = vld [vmem:[#allocation5 + $0x158] sm:$0xff]  ;;  %v154_v33 = vld [vmem:[#allocation5 + $0x2c8] sm:$0xff] }
  0x72   :  { %550 = vmatpush.msrb.mxu1 %v281_v39  ;;  %v220_v39 = vld [vmem:[#allocation5 + $0x4d8] sm:$0xff]  ;;  %337 = vmatpush.msra.mxu2 %v115_v36  ;;  %v266_v36 = vld [vmem:[#allocation5 + $0x648] sm:$0xff] }
  0x73   :  { %531 = vmatpush.msrb.mxu0 %v162_v40  ;;  %357 = vmatpush.msra.mxu3 %v227_v37  ;;  %v101_v40 = vld [vmem:[#allocation5 + $0x120] sm:$0xff]  ;;  %v147_v37 = vld [vmem:[#allocation5 + $0x290] sm:$0xff] }
  0x74   :  { %551 = vmatpush.msrb.mxu1 %v274_v41  ;;  %v213_v41 = vld [vmem:[#allocation5 + $0x4a0] sm:$0xff]  ;;  %338 = vmatpush.msra.mxu2 %v108_v38  ;;  %v259_v38 = vld [vmem:[#allocation5 + $0x610] sm:$0xff] }
  0x75   :  { %532 = vmatpush.msrb.mxu0 %v155_v42  ;;  %358 = vmatpush.msra.mxu3 %v220_v39  ;;  %v94_v42 = vld [vmem:[#allocation5 + $0xe8] sm:$0xff]  ;;  %v140_v39 = vld [vmem:[#allocation5 + $0x258] sm:$0xff] }
  0x76   :  { %552 = vmatpush.msrb.mxu1 %v267_v43  ;;  %v206_v43 = vld [vmem:[#allocation5 + $0x468] sm:$0xff]  ;;  %339 = vmatpush.msra.mxu2 %v101_v40  ;;  %v252_v40 = vld [vmem:[#allocation5 + $0x5d8] sm:$0xff] }
  0x77   :  { %533 = vmatpush.msrb.mxu0 %v148_v44  ;;  %359 = vmatpush.msra.mxu3 %v213_v41  ;;  %v87_v44 = vld [vmem:[#allocation5 + $0xb0] sm:$0xff]  ;;  %v133_v41 = vld [vmem:[#allocation5 + $0x220] sm:$0xff] }
  0x78   :  { %553 = vmatpush.msrb.mxu1 %v260_v45  ;;  %v199_v45 = vld [vmem:[#allocation5 + $0x430] sm:$0xff]  ;;  %340 = vmatpush.msra.mxu2 %v94_v42  ;;  %v245_v42 = vld [vmem:[#allocation5 + $0x5a0] sm:$0xff] }
  0x79   :  { %534 = vmatpush.msrb.mxu0 %v141_v46  ;;  %360 = vmatpush.msra.mxu3 %v206_v43  ;;  %v80_v46 = vld [vmem:[#allocation5 + $0x78] sm:$0xff]  ;;  %v126_v43 = vld [vmem:[#allocation5 + $0x1e8] sm:$0xff] }
  0x7a   :  { %554 = vmatpush.msrb.mxu1 %v253_v47  ;;  %v192_v47 = vld [vmem:[#allocation5 + $0x3f8] sm:$0xff]  ;;  %341 = vmatpush.msra.mxu2 %v87_v44  ;;  %v238_v44 = vld [vmem:[#allocation5 + $0x568] sm:$0xff] }
  0x7b   :  { %535 = vmatpush.msrb.mxu0 %v134_v48  ;;  %361 = vmatpush.msra.mxu3 %v199_v45  ;;  %v73_v48 = vld [vmem:[#allocation5 + $0x40] sm:$0xff]  ;;  %v119_v45 = vld [vmem:[#allocation5 + $0x1b0] sm:$0xff] }
  0x7c   :  { %555 = vmatpush.msrb.mxu1 %v246_v49  ;;  %v185_v49 = vld [vmem:[#allocation5 + $0x3c0] sm:$0xff]  ;;  %342 = vmatpush.msra.mxu2 %v80_v46  ;;  %v231_v46 = vld [vmem:[#allocation5 + $0x530] sm:$0xff] }
  0x7d   :  { %536 = vmatpush.msrb.mxu0 %v127_v50  ;;  %362 = vmatpush.msra.mxu3 %v192_v47  ;;  %v66_v50 = vld [vmem:[#allocation5 + $0x8] sm:$0xff]  ;;  %v112_v47 = vld [vmem:[#allocation5 + $0x178] sm:$0xff] }
  0x7e   :  { %556 = vmatpush.msrb.mxu1 %v239_v51  ;;  %v178_v51 = vld [vmem:[#allocation5 + $0x388] sm:$0xff]  ;;  %343 = vmatpush.msra.mxu2 %v73_v48  ;;  %v224_v48 = vld [vmem:[#allocation5 + $0x4f8] sm:$0xff] }
  0x7f   :  { %537 = vmatpush.msrb.mxu0 %v120_v52  ;;  %363 = vmatpush.msra.mxu3 %v185_v49  ;;  %v173_v52 = vld [vmem:[#allocation5 + $0x360] sm:$0xff] }
  0x80   :  { %557 = vmatpush.msrb.mxu1 %v232_v53  ;;  %v285_v53 = vld [vmem:[#allocation5 + $0x6e0] sm:$0xff]  ;;  %344 = vmatpush.msra.mxu2 %v66_v50 }
  0x81   :  { %538 = vmatpush.msrb.mxu0 %v113_v54  ;;  %364 = vmatpush.msra.mxu3 %v178_v51  ;;  %v166_v54 = vld [vmem:[#allocation5 + $0x328] sm:$0xff]  ;;  %v105_v49 = vld [vmem:[#allocation5 + $0x140] sm:$0xff] }
  0x82   :  { %558 = vmatpush.msrb.mxu1 %v225_v55  ;;  %v278_v55 = vld [vmem:[#allocation5 + $0x6a8] sm:$0xff]  ;;  %409 = vmatpush.msrb.mxu2 %v173_v52  ;;  %v217_v50 = vld [vmem:[#allocation5 + $0x4c0] sm:$0xff] }
  0x83   :  { %539 = vmatpush.msrb.mxu0 %v106_v56  ;;  %429 = vmatpush.msrb.mxu3 %v285_v53  ;;  %v98_v51 = vld [vmem:[#allocation5 + $0x108] sm:$0xff]  ;;  %v91_v53 = vld [vmem:[#allocation5 + $0xd0] sm:$0xff] }
  0x84   :  { %559 = vmatpush.msrb.mxu1 %v218_v57  ;;  %345 = vmatmul.f32.vlgmr.msra.gmra.mxu2 %v865_v34  ;;  %v210_v52 = vld [vmem:[#allocation5 + $0x488] sm:$0xff] }
  0x85   :  { %540 = vmatpush.msrb.mxu0 %v99_v58  ;;  %v159_v58 = vld [vmem:[#allocation5 + $0x2f0] sm:$0xff]  ;;  %365 = vmatmul.f32.vlgmr.msra.gmra.mxu3 %v867_v35 }
  0x86   :  { %560 = vmatpush.msrb.mxu1 %v211_v59  ;;  %v271_v59 = vld [vmem:[#allocation5 + $0x670] sm:$0xff]  ;;  %410 = vmatpush.msrb.mxu2 %v166_v54 }
  0x87   :  { %541 = vmatpush.msrb.mxu0 %v92_v60  ;;  %430 = vmatpush.msrb.mxu3 %v278_v55  ;;  %v203_v54 = vld [vmem:[#allocation5 + $0x450] sm:$0xff]  ;;  %v84_v55 = vld [vmem:[#allocation5 + $0x98] sm:$0xff] }
  0x88   :  { %561 = vmatpush.msrb.mxu1 %v204_v61  ;;  %v152_v61 = vld [vmem:[#allocation5 + $0x2b8] sm:$0xff]  ;;  %411 = vmatpush.msrb.mxu2 %v159_v58  ;;  %v189_v58 = vld [vmem:[#allocation5 + $0x3e0] sm:$0xff] }
  0x89   :  { %542 = vmatpush.msrb.mxu0 %v85_v62  ;;  %v264_v62 = vld [vmem:[#allocation5 + $0x638] sm:$0xff]  ;;  %431 = vmatpush.msrb.mxu3 %v271_v59  ;;  %v70_v59 = vld [vmem:[#allocation5 + $0x28] sm:$0xff] }
  0x8a   :  { %562 = vmatpush.msrb.mxu1 %v197_v63  ;;  %v145_v63 = vld [vmem:[#allocation5 + $0x280] sm:$0xff]  ;;  %412 = vmatpush.msrb.mxu2 %v152_v61  ;;  %v613_v61 = vld [vmem:[#allocation7 + $0xf0] sm:$0xff] }
  0x8b   :  { %543 = vmatpush.msrb.mxu0 %v78_v0  ;;  %v257_v0 = vld [vmem:[#allocation5 + $0x600] sm:$0xff]  ;;  %432 = vmatpush.msrb.mxu3 %v264_v62  ;;  %v614_v62 = vld [vmem:[#allocation7 + $0xf8] sm:$0xff] }
  0x8c   :  { %563 = vmatpush.msrb.mxu1 %v190_v1  ;;  %v138_v1 = vld [vmem:[#allocation5 + $0x248] sm:$0xff]  ;;  %413 = vmatpush.msrb.mxu2 %v145_v63  ;;  %v611_v63 = vld [vmem:[#allocation7 + $0xe0] sm:$0xff] }
  0x8d   :  { %544 = vmatpush.msrb.mxu0 %v71_v2  ;;  %v250_v2 = vld [vmem:[#allocation5 + $0x5c8] sm:$0xff]  ;;  %433 = vmatpush.msrb.mxu3 %v257_v0 }
  0x8e   :  { %564 = vmatpush.msrb.mxu1 %v183_v3  ;;  %545 = vmatmul.f32.vlgmr.msrb.gmra.mxu0 %v865_v34  ;;  %v131_v3 = vld [vmem:[#allocation5 + $0x210] sm:$0xff]  ;;  %v612_v0 = vld [vmem:[#allocation7 + $0xe8] sm:$0xff] }
  0x8f   :  { %565 = vmatmul.f32.vlgmr.msrb.gmra.mxu1 %v867_v35  ;;  %414 = vmatpush.msrb.mxu2 %v138_v1  ;;  %v609_v1 = vld [vmem:[#allocation7 + $0xd0] sm:$0xff] }
  0x90   :  { %434 = vmatpush.msrb.mxu3 %v250_v2  ;;  %v610_v2 = vld [vmem:[#allocation7 + $0xd8] sm:$0xff] }
  0x91   :  { %415 = vmatpush.msrb.mxu2 %v131_v3  ;;  %v607_v3 = vld [vmem:[#allocation7 + $0xc0] sm:$0xff] }
  0xab   :  { %v306_v4 = vpop.f32.mrf.mxu0 }
  0xac   :  { %v326_v5 = vpop.f32.mrf.mxu1 }
  0xad   :  { %v877_v6 = vadd.f32 %v326_v5, %v306_v4  ;;  %v243_v4 = vld [vmem:[#allocation5 + $0x590] sm:$0xff] }
  0xae   :  { %435 = vmatpush.msrb.mxu3 %v243_v4  ;;  %v608_v4 = vld [vmem:[#allocation7 + $0xc8] sm:$0xff] }
  0xcb   :  { %v386_v7 = vpop.f32.mrf.mxu0 }
  0xcc   :  { %v406_v8 = vpop.f32.mrf.mxu1 }
  0xcd   :  { %v879_v9 = vadd.f32 %v406_v8, %v386_v7  ;;  %v124_v7 = vld [vmem:[#allocation5 + $0x1d8] sm:$0xff] }
  0xce   :  { %v236_v8 = vld [vmem:[#allocation5 + $0x558] sm:$0xff]  ;;  %416 = vmatpush.msrb.mxu2 %v124_v7  ;;  %v605_v7 = vld [vmem:[#allocation7 + $0xb0] sm:$0xff] }
  0xcf   :  { %436 = vmatpush.msrb.mxu3 %v236_v8  ;;  %v606_v8 = vld [vmem:[#allocation7 + $0xb8] sm:$0xff] }
  0xeb   :  { %v466_v10 = vpop.f32.mrf.mxu0 }
  0xec   :  { %v486_v11 = vpop.f32.mrf.mxu1 }
  0xed   :  { %v881_v12 = vadd.f32 %v486_v11, %v466_v10  ;;  %v117_v10 = vld [vmem:[#allocation5 + $0x1a0] sm:$0xff] }
  0xee   :  { %v229_v11 = vld [vmem:[#allocation5 + $0x520] sm:$0xff]  ;;  %417 = vmatpush.msrb.mxu2 %v117_v10 }
  0xef   :  { %437 = vmatpush.msrb.mxu3 %v229_v11  ;;  %v603_v10 = vld [vmem:[#allocation7 + $0xa0] sm:$0xff]  ;;  %v602_v11 = vld [vmem:[#allocation7 + $0x98] sm:$0xff] }
 0x10b   :  { %v546_v14 = vpop.f32.mrf.mxu0 }
 0x10c   :  { %v566_v15 = vpop.f32.mrf.mxu1 }
 0x10d   :  { %v567_v16 = vadd.f32 %v566_v15, %v546_v14  ;;  %v222_v14 = vld [vmem:[#allocation5 + $0x4e8] sm:$0xff]  ;;  %v103_v15 = vld [vmem:[#allocation5 + $0x130] sm:$0xff] }
 0x10e   :  { %438 = vmatpush.msrb.mxu3 %v222_v14  ;;  %v600_v14 = vld [vmem:[#allocation7 + $0x88] sm:$0xff] }
 0x10f   :  { %v886_v17 = vadd.f32 %v713_v13, %v567_v16  ;;  %v110_v13 = vld [vmem:[#allocation5 + $0x168] sm:$0xff]  ;;  %v215_v16 = vld [vmem:[#allocation5 + $0x4b0] sm:$0xff] }
 0x110   :  { %418 = vmatpush.msrb.mxu2 %v110_v13  ;;  %439 = vmatpush.msrb.mxu3 %v215_v16  ;;  %v599_v13 = vld [vmem:[#allocation7 + $0x80] sm:$0xff]  ;;  %v598_v16 = vld [vmem:[#allocation7 + $0x78] sm:$0xff] }
 0x111   :  { %574 = vmax.xlane.f32.xlu0 %v886_v17 }
 0x112   :  { %419 = vmatpush.msrb.mxu2 %v103_v15  ;;  %440 = vmatpush.msrb.mxu3 %v208_v18  ;;  %v597_v15 = vld [vmem:[#allocation7 + $0x70] sm:$0xff]  ;;  %v596_v18 = vld [vmem:[#allocation7 + $0x68] sm:$0xff] }
 0x114   :  { %441 = vmatpush.msrb.mxu3 %v201_v20  ;;  %v594_v20 = vld [vmem:[#allocation7 + $0x58] sm:$0xff] }
 0x116   :  { %442 = vmatpush.msrb.mxu3 %v194_v22  ;;  %v592_v22 = vld [vmem:[#allocation7 + $0x48] sm:$0xff] }
 0x118   :  { %443 = vmatpush.msrb.mxu3 %v187_v24  ;;  %v590_v24 = vld [vmem:[#allocation7 + $0x38] sm:$0xff] }
 0x11a   :  { %444 = vmatpush.msrb.mxu3 %v180_v26  ;;  %v588_v26 = vld [vmem:[#allocation7 + $0x28] sm:$0xff] }
 0x11b   :  { %445 = vmatmul.f32.vlgmr.msrb.gmra.mxu3 %v867_v35 }
 0x11c   :  { %509 = vmatpush.msra.mxu3 %v287_v28  ;;  %v586_v28 = vld [vmem:[#allocation7 + $0x18] sm:$0xff] }
 0x11e   :  { %510 = vmatpush.msra.mxu3 %v280_v30  ;;  %v584_v30 = vld [vmem:[#allocation7 + $0x8] sm:$0xff] }
 0x120   :  { %511 = vmatpush.msra.mxu3 %v273_v32  ;;  %v828_v32 = vmov 0  }
 0x121   :  { %709 = vset.pattern.permute.xlu1 %v828_v32 }
 0x122   :  { %512 = vmatpush.msra.mxu3 %v266_v36 }
 0x124   :  { %513 = vmatpush.msra.mxu3 %v259_v38  ;;  %v829_v38 = vmov 1  }
 0x126   :  { %514 = vmatpush.msra.mxu3 %v252_v40  ;;  %v366_v40 = vpop.f32.mrf.mxu3 }
 0x128   :  { %515 = vmatpush.msra.mxu3 %v245_v42 }
 0x12a   :  { %516 = vmatpush.msra.mxu3 %v238_v44 }
 0x12c   :  { %517 = vmatpush.msra.mxu3 %v231_v46 }
 0x12e   :  { %518 = vmatpush.msra.mxu3 %v224_v48 }
 0x130   :  { %519 = vmatpush.msra.mxu3 %v217_v50 }
 0x132   :  { %520 = vmatpush.msra.mxu3 %v210_v52 }
 0x134   :  { %521 = vmatpush.msra.mxu3 %v203_v54 }
 0x184   :  { %v575_v56 = vpop.xlane.xlu0 %574 }
 0x185   :  { %v576_v57 = vsub.f32 %v886_v17, %v575_v56  ;;  %v96_v17 = vld [vmem:[#allocation5 + $0xf8] sm:$0xff] }
 0x186   :  { %420 = vmatpush.msrb.mxu2 %v96_v17  ;;  %v196_v56 = vld [vmem:[#allocation5 + $0x418] sm:$0xff]  ;;  %v595_v17 = vld [vmem:[#allocation7 + $0x60] sm:$0xff] }
 0x187   :  { %v577_v60 = vmul.f32 1.442695, %v576_v57  ;;  %v77_v57 = vld [vmem:[#allocation5 + $0x60] sm:$0xff]  ;;  %522 = vmatpush.msra.mxu3 %v196_v56 }
 0x188   :  { %421 = vmatpush.msrb.mxu2 %v89_v19  ;;  %v593_v19 = vld [vmem:[#allocation7 + $0x50] sm:$0xff] }
 0x189   :  { %714 = vpow2.f32 %v577_v60  ;;  %v182_v60 = vld [vmem:[#allocation5 + $0x3a8] sm:$0xff]  ;;  %523 = vmatpush.msra.mxu3 %v189_v58 }
 0x18a   :  { %422 = vmatpush.msrb.mxu2 %v82_v21  ;;  %v591_v21 = vld [vmem:[#allocation7 + $0x40] sm:$0xff] }
 0x18b   :  { %524 = vmatpush.msra.mxu3 %v182_v60 }
 0x18c   :  { %423 = vmatpush.msrb.mxu2 %v75_v23  ;;  %525 = vmatmul.f32.vlgmr.msra.gmra.mxu3 %v867_v35  ;;  %v601_v35 = vld [vmem:[#allocation7 + $0x90] sm:$0xff] }
 0x18d   :  { %642 = vmatpush.msrb.mxu3 %v614_v62  ;;  %v589_v23 = vld [vmem:[#allocation7 + $0x30] sm:$0xff] }
 0x18e   :  { %424 = vmatpush.msrb.mxu2 %v68_v25  ;;  %v587_v25 = vld [vmem:[#allocation7 + $0x20] sm:$0xff] }
 0x18f   :  { %v892_v5 = vpop.eup %714  ;;  %425 = vmatmul.f32.vlgmr.msrb.gmra.mxu2 %v865_v34  ;;  %643 = vmatpush.msrb.mxu3 %v612_v0 }
 0x190   :  { %579 = vadd.xlane.f32.xlu0 %v892_v5  ;;  %489 = vmatpush.msra.mxu2 %v175_v27  ;;  %v585_v27 = vld [vmem:[#allocation7 + $0x10] sm:$0xff] }
 0x191   :  { %644 = vmatpush.msrb.mxu3 %v610_v2 }
 0x192   :  { %490 = vmatpush.msra.mxu2 %v168_v29  ;;  %v583_v29 = vld [vmem:[#allocation7] sm:$0xff] }
 0x193   :  { %645 = vmatpush.msrb.mxu3 %v608_v4 }
 0x194   :  { %491 = vmatpush.msra.mxu2 %v161_v31  ;;  %v827_v31 = vmov 2  }
 0x195   :  { %646 = vmatpush.msrb.mxu3 %v606_v8  ;;  %711 = vset.pattern.permute.xlu2 %v827_v31 }
 0x196   :  { %492 = vmatpush.msra.mxu2 %v154_v33  ;;  %712 = vset.pattern.permute.xlu0 %v827_v31 }
 0x198   :  { %493 = vmatpush.msra.mxu2 %v147_v37 }
 0x19a   :  { %494 = vmatpush.msra.mxu2 %v140_v39  ;;  %v346_v39 = vpop.f32.mrf.mxu2 }
 0x19b   :  { %v367_v46 = vadd.f32 %v366_v40, %v346_v39 }
 0x19c   :  { %495 = vmatpush.msra.mxu2 %v133_v41 }
 0x19e   :  { %496 = vmatpush.msra.mxu2 %v126_v43  ;;  %v446_v42 = vpop.f32.mrf.mxu3 }
 0x1a0   :  { %497 = vmatpush.msra.mxu2 %v119_v45 }
 0x1a2   :  { %498 = vmatpush.msra.mxu2 %v112_v47 }
 0x1a4   :  { %499 = vmatpush.msra.mxu2 %v105_v49 }
 0x1a6   :  { %500 = vmatpush.msra.mxu2 %v98_v51 }
 0x1a8   :  { %501 = vmatpush.msra.mxu2 %v91_v53 }
 0x1aa   :  { %502 = vmatpush.msra.mxu2 %v84_v55 }
 0x1ac   :  { %503 = vmatpush.msra.mxu2 %v77_v57 }
 0x1ae   :  { %504 = vmatpush.msra.mxu2 %v70_v59 }
 0x1af   :  { %505 = vmatmul.f32.vlgmr.msra.gmra.mxu2 %v865_v34  ;;  %v604_v34 = vld [vmem:[#allocation7 + $0xa8] sm:$0xff] }
 0x1b0   :  { %622 = vmatpush.msrb.mxu2 %v613_v61  ;;  %647 = vmatpush.msrb.mxu3 %v604_v34 }
 0x1b2   :  { %623 = vmatpush.msrb.mxu2 %v611_v63  ;;  %648 = vmatpush.msrb.mxu3 %v602_v11 }
 0x1b4   :  { %624 = vmatpush.msrb.mxu2 %v609_v1  ;;  %649 = vmatpush.msrb.mxu3 %v600_v14 }
 0x1b6   :  { %625 = vmatpush.msrb.mxu2 %v607_v3  ;;  %650 = vmatpush.msrb.mxu3 %v598_v16 }
 0x1b8   :  { %626 = vmatpush.msrb.mxu2 %v605_v7  ;;  %651 = vmatpush.msrb.mxu3 %v596_v18 }
 0x1ba   :  { %627 = vmatpush.msrb.mxu2 %v603_v10  ;;  %652 = vmatpush.msrb.mxu3 %v594_v20 }
 0x1bc   :  { %628 = vmatpush.msrb.mxu2 %v601_v35  ;;  %653 = vmatpush.msrb.mxu3 %v592_v22 }
 0x1be   :  { %629 = vmatpush.msrb.mxu2 %v599_v13  ;;  %654 = vmatpush.msrb.mxu3 %v590_v24 }
 0x1c0   :  { %630 = vmatpush.msrb.mxu2 %v597_v15  ;;  %655 = vmatpush.msrb.mxu3 %v588_v26 }
 0x1c2   :  { %631 = vmatpush.msrb.mxu2 %v595_v17  ;;  %656 = vmatpush.msrb.mxu3 %v586_v28 }
 0x1c4   :  { %632 = vmatpush.msrb.mxu2 %v593_v19  ;;  %657 = vmatpush.msrb.mxu3 %v584_v30 }
 0x1c6   :  { %633 = vmatpush.msrb.mxu2 %v591_v21 }
 0x1c8   :  { %634 = vmatpush.msrb.mxu2 %v589_v23 }
 0x1ca   :  { %635 = vmatpush.msrb.mxu2 %v587_v25 }
 0x1cc   :  { %636 = vmatpush.msrb.mxu2 %v585_v27 }
 0x1ce   :  { %637 = vmatpush.msrb.mxu2 %v583_v29 }
 0x203   :  { %v580_v33 = vpop.xlane.xlu0 %579 }
 0x204   :  { %716 = vrcp.f32 %v580_v33 }
 0x20a   :  { %v717_v36 = vpop.eup %716 }
 0x20b   :  { %v582_v37 = vmul.f32 %v717_v36, %v892_v5 }
 0x20d   :  { %671 = vperm.xlu2 %711, %v582_v37   ;;  %617 = vperm.xlu1 %709, %v582_v37  }
 0x20e   :  { %638 = vmatmul.f32.vlgmr.msrb.gmra.mxu2 %v582_v37  ;;  %658 = vmatmul.f32.vlgmr.msrb.gmra.mxu3 %v582_v37 }
 0x20f   :  { %v526_v45 = vpop.f32.mrf.mxu3 }
 0x212   :  { %v426_v41 = vpop.f32.mrf.mxu2 }
 0x213   :  { %v447_v48 = vadd.f32 %v446_v42, %v426_v41 }
 0x215   :  { %710 = vset.pattern.permute.xlu1 %v829_v38 }
 0x216   :  { %663 = vperm.xlu1 %710, %v582_v37  }
 0x232   :  { %v506_v44 = vpop.f32.mrf.mxu2 }
 0x233   :  { %v527_v49 = vadd.f32 %v526_v45, %v506_v44 }
 0x267   :  { %v672_v50 = vpop.permute.xlu2 %671 }
 0x268   :  { %v674_v58 = vmul.f32 %v672_v50, %v881_v12  ;;  %v675_v59 = vmul.f32 %v672_v50, %v527_v49 }
 0x27f   :  { %v618_v43 = vpop.permute.xlu1 %617 }
 0x280   :  { %v620_v5 = vmul.f32 %v618_v43, %v877_v6  ;;  %v621_v51 = vmul.f32 %v618_v43, %v367_v46 }
 0x288   :  { %v664_v47 = vpop.permute.xlu1 %663 }
 0x289   :  { %v666_v54 = vmul.f32 %v664_v47, %v879_v9  ;;  %v667_v55 = vmul.f32 %v664_v47, %v447_v48 }
 0x291   :  { %v639_v52 = vpop.f32.mrf.mxu2  ;;  %v659_v53 = vpop.f32.mrf.mxu3 }
 0x292   :  { %v640_v56 = vadd.f32 %v639_v52, %v620_v5  ;;  %v660_v57 = vadd.f32 %v659_v53, %v621_v51 }
 0x294   :  { %v668_v60 = vadd.f32 %v666_v54, %v640_v56  ;;  %v669_v61 = vadd.f32 %v667_v55, %v660_v57 }
 0x296   :  { %v676_v6 = vadd.f32 %v674_v58, %v668_v60  ;;  %v677_v62 = vadd.f32 %v675_v59, %v669_v61 }
 0x298   :  { %678 = vst [vmem:[#allocation8] sm:$0xff] %v676_v6 }
 0x299   :  { %679 = vst [vmem:[#allocation8 + $0x8] sm:$0xff] %v677_v62 }
 0x29a   :  { %690 = dma.vmem_to_hbm [thread:$0]  %s686_s7, 256, %s688_s10, [#allocation4]  }
 0x29b   :  { %818 = dma.done.wait [#allocation4], 256  }
 0x29c   :  { %819 = vsyncadd [#allocation4], 4294967040 }
 0x29d   :  { %695 = vsyncpa [#allocation3], 1 }
 0x29e   :  { %696 = vsyncpa [#allocation6], 1 }
 0x29f   :  { %697 = vsyncpa [#allocation4], 1 }

</bundles_post_ra>
